<compile_context>
chip_gen: v6e
topology: v6e:2x2x1
jax: 0.10.0
libtpu: 0.0.40
codegen_flags: <defaults>
</compile_context>

<pallas_src>
import functools

import jax
import jax.numpy as jnp
from jax.experimental import pallas as pl
from jax.experimental.pallas import tpu as pltpu


def _round_up(n, m):
    return ((n + m - 1) // m) * m


def _pick_tf(F, tf):
    """Largest feature tile <= tf that divides F and is a multiple of 128 (else F)."""
    if F <= tf:
        return F
    c = (min(tf, F) // 128) * 128
    while c >= 128:
        if F % c == 0:
            return c
        c -= 128
    return F


def _sae_kernel(x_ref, we_ref, be_ref, wd_ref, bd_ref,
                xhat_ref, reg_ref, ap_ref, se_ref,
                acc_ref, reg_acc, ap_acc):
    """Grid point (i, j): batch tile i, feature-column block j (reduction axis)."""
    j = pl.program_id(1)

    @pl.when(j == 0)
    def _init():
        acc_ref[...] = jnp.zeros_like(acc_ref)
        reg_acc[...] = jnp.zeros_like(reg_acc)
        ap_acc[...] = jnp.zeros_like(ap_acc)

    # Encoder for feature block j: f = relu(x @ We_t[:, j] + b_enc_eff[j]).
    # (The (x - b_dec) centering is folded into b_enc_eff by the wrapper.)
    pre = jnp.dot(x_ref[...], we_ref[...], preferred_element_type=jnp.float32)
    f = jnp.maximum(pre + be_ref[...].astype(jnp.float32), 0.0)        # (tb, tf) f32

    # Decoder partial sum: x_hat_acc += f @ Wd_t[j]   (f32 accumulator).
    acc_ref[...] += jnp.dot(f.astype(wd_ref.dtype), wd_ref[...],
                            preferred_element_type=jnp.float32)

    # In-kernel reductions (ReLU output is >= 0, so |f| == f).
    reg_acc[...] += jnp.sum(f, axis=-1, keepdims=True)
    ap_acc[...] += jnp.sum((f > 0.0).astype(jnp.float32), axis=-1, keepdims=True)

    @pl.when(j == pl.num_programs(1) - 1)
    def _finalize():
        xhat_f32 = acc_ref[...] + bd_ref[...].astype(jnp.float32)
        xhat_ref[...] = xhat_f32.astype(xhat_ref.dtype)
        reg_ref[...] = reg_acc[...]
        ap_ref[...] = ap_acc[...]
        # Per-row squared reconstruction error (for mse), computed while both x and
        # x_hat tiles are already resident in VMEM.
        diff = xhat_f32 - x_ref[...].astype(jnp.float32)
        se_ref[...] = jnp.sum(diff * diff, axis=-1, keepdims=True)


@functools.partial(jax.jit, static_argnames=("tb", "tf"))
def sae_forward_pallas(x, we_t, b_enc_eff, wd_t, b_dec, *, tb=256, tf=512):
    """x: [B, D]; we_t: [D, F] (pre-transposed, F possibly zero-padded);
    wd_t: [F, D] (pre-transposed); b_enc_eff: [1, F] (centering folded in);
    b_dec: [1, D].
    Returns (x_hat [B, D] in x.dtype, reg_rows [B], ap_rows [B], se_rows [B])."""
    B, D = x.shape
    Dw, F = we_t.shape
    assert Dw == D and wd_t.shape == (F, D)

    # Adapt tiles to the actual problem size (small test shapes shrink cleanly).
    tb_eff = min(tb, _round_up(B, 8))
    B_pad = _round_up(B, tb_eff)
    tf_eff = _pick_tf(F, tf)

    x_c = x.astype(we_t.dtype)
    if B_pad != B:
        x_c = jnp.pad(x_c, ((0, B_pad - B), (0, 0)))

    grid = (B_pad // tb_eff, F // tf_eff)

    xhat, reg, ap, se = pl.pallas_call(
        _sae_kernel,
        out_shape=(
            jax.ShapeDtypeStruct((B_pad, D), x.dtype),
            jax.ShapeDtypeStruct((B_pad, 1), jnp.float32),
            jax.ShapeDtypeStruct((B_pad, 1), jnp.float32),
            jax.ShapeDtypeStruct((B_pad, 1), jnp.float32),
        ),
        grid_spec=pltpu.PrefetchScalarGridSpec(
            num_scalar_prefetch=0,
            grid=grid,
            in_specs=[
                pl.BlockSpec((tb_eff, D), lambda i, j: (i, 0)),   # x tile (resident over j)
                pl.BlockSpec((D, tf_eff), lambda i, j: (0, j)),   # W_enc^T column block
                pl.BlockSpec((1, tf_eff), lambda i, j: (0, j)),   # b_enc_eff block
                pl.BlockSpec((tf_eff, D), lambda i, j: (j, 0)),   # W_dec^T row block
                pl.BlockSpec((1, D), lambda i, j: (0, 0)),        # b_dec (fetched once)
            ],
            out_specs=[
                pl.BlockSpec((tb_eff, D), lambda i, j: (i, 0)),   # x_hat tile
                pl.BlockSpec((tb_eff, 1), lambda i, j: (i, 0)),   # per-row sum|f|
                pl.BlockSpec((tb_eff, 1), lambda i, j: (i, 0)),   # per-row count(f>0)
                pl.BlockSpec((tb_eff, 1), lambda i, j: (i, 0)),   # per-row sum sq err
            ],
            scratch_shapes=[
                pltpu.VMEM((tb_eff, D), jnp.float32),             # x_hat accumulator
                pltpu.VMEM((tb_eff, 1), jnp.float32),             # reg accumulator
                pltpu.VMEM((tb_eff, 1), jnp.float32),             # ap accumulator
            ],
        ),
        compiler_params=pltpu.CompilerParams(
            dimension_semantics=("parallel", "arbitrary"),
            vmem_limit_bytes=48 * 1024 * 1024,
        ),
    )(x_c, we_t, b_enc_eff, wd_t, b_dec)

    if B_pad != B:
        xhat, reg, ap, se = xhat[:B], reg[:B], ap[:B], se[:B]
    return xhat, reg[:, 0], ap[:, 0], se[:, 0]


def prepare_params(params, compute_dtype=jnp.bfloat16):
    """One-time glue: pre-transpose weights (avoids per-call HBM transposes), fold the
    (x - b_dec) centering into the encoder bias, and zero-pad the feature dim to a
    multiple of 128 (padded features are dead: f == 0)."""
    w_enc, b_enc = params["w_enc"], params["b_enc"]          # [F, D], [F]
    w_dec, b_dec = params["w_dec"], params["b_dec"]          # [D, F], [D]
    F, D = w_enc.shape
    we_t_f32 = w_enc.T                                       # [D, F]
    wd_t_f32 = w_dec.T                                       # [F, D]
    # b_enc_eff = b_enc - b_dec @ W_enc^T   (high-precision, computed once)
    b_enc_eff = b_enc - jnp.dot(b_dec, we_t_f32,
                                precision=jax.lax.Precision.HIGHEST)
    F_pad = _round_up(F, 128)
    if F_pad != F:
        we_t_f32 = jnp.pad(we_t_f32, ((0, 0), (0, F_pad - F)))
        wd_t_f32 = jnp.pad(wd_t_f32, ((0, F_pad - F), (0, 0)))
        b_enc_eff = jnp.pad(b_enc_eff, ((0, F_pad - F),))
    return {
        "we_t": we_t_f32.astype(compute_dtype),
        "wd_t": wd_t_f32.astype(compute_dtype),
        "b_enc_eff": b_enc_eff.astype(jnp.float32).reshape(1, F_pad),
        "b_dec": b_dec.astype(jnp.float32).reshape(1, D),
    }


def sae_forward(x, prepared, compute_loss=False, compute_ap=False, *, tb=256, tf=512):
    """Mirrors SparseAutoencoder.forward. Matmuls + ReLU + all f/x_hat reductions run in
    the Pallas kernel; only tiny [B]-length means remain as plain-JAX glue."""
    xhat, reg_rows, ap_rows, se_rows = sae_forward_pallas(
        x, prepared["we_t"], prepared["b_enc_eff"], prepared["wd_t"],
        prepared["b_dec"], tb=tb, tf=tf)
    if compute_loss:
        d_model = x.shape[-1]
        recon_loss = jnp.mean(se_rows) / d_model   # == mean over all B*D elements
        reg_loss = jnp.mean(reg_rows)
    else:
        recon_loss = None
        reg_loss = None
    if compute_ap:
        ap = jnp.mean(ap_rows)
        return xhat, recon_loss, reg_loss, ap
    return xhat, recon_loss, reg_loss


def init_params(key, n_feat, d_model):
    """Deterministic synthetic init matching nn.Linear parameter shapes."""
    k1, k2, k3, k4 = jax.random.split(key, 4)
    lim_e = 1.0 / jnp.sqrt(d_model)
    lim_d = 1.0 / jnp.sqrt(n_feat)
    return {
        "w_enc": jax.random.uniform(k1, (n_feat, d_model), jnp.float32, -lim_e, lim_e),
        "b_enc": jax.random.uniform(k2, (n_feat,), jnp.float32, -lim_e, lim_e),
        "w_dec": jax.random.uniform(k3, (d_model, n_feat), jnp.float32, -lim_d, lim_d),
        "b_dec": jax.random.uniform(k4, (d_model,), jnp.float32, -lim_d, lim_d),
    }


# TODO(synk): normalize_decoder_weights is a training-time utility (row-normalize W_dec);
# it is plain-JAX glue outside the forward kernel and not implemented here.


if __name__ == "__main__":
    B, d_model, n_feat = 8, 128, 256
    key = jax.random.PRNGKey(0)
    kx, kp = jax.random.split(key)
    x = jax.random.normal(kx, (B, d_model), jnp.float32)
    params = init_params(kp, n_feat, d_model)

    # Plain-JAX reference (PyTorch semantics).
    xc = x - params["b_dec"][None, :]
    f_ref = jnp.maximum(xc @ params["w_enc"].T + params["b_enc"][None, :], 0.0)
    xhat_ref = f_ref @ params["w_dec"].T + params["b_dec"][None, :]
    rl_ref = jnp.mean((xhat_ref - x) ** 2)
    gl_ref = jnp.mean(jnp.sum(jnp.abs(f_ref), axis=-1))
    ap_ref = jnp.mean(jnp.sum((f_ref > 0).astype(jnp.float32), axis=-1))

    # f32 compute path: tighter numerical check.
    prep_f32 = prepare_params(params, compute_dtype=jnp.float32)
    xhat, recon_loss, reg_loss = sae_forward(x, prep_f32)
    jax.block_until_ready(xhat)
    assert jnp.allclose(xhat, xhat_ref, atol=2e-3, rtol=2e-3), "f32 x_hat mismatch"

    xhat2, rl, gl, ap = sae_forward(x, prep_f32, compute_loss=True, compute_ap=True)
    jax.block_until_ready((xhat2, rl, gl, ap))
    assert jnp.allclose(rl, rl_ref, atol=1e-2, rtol=1e-2), "recon loss mismatch"
    assert jnp.allclose(gl, gl_ref, atol=1e-2, rtol=1e-2), "reg loss mismatch"
    assert float(jnp.abs(ap - ap_ref)) <= 1.0 + 1e-6, "active-feature count mismatch"

    # bf16 compute path (default / fast): relaxed check.
    prep_bf16 = prepare_params(params)  # bfloat16 weights/activations, f32 accumulation
    xhat_bf, _, _ = sae_forward(x, prep_bf16)
    jax.block_until_ready(xhat_bf)
    assert jnp.allclose(xhat_bf.astype(jnp.float32), xhat_ref,
                        atol=1e-1, rtol=1e-1), "bf16 x_hat mismatch"

    print("KERNEL_OK")
</pallas_src>

<mosaic_0001>
module attributes {stable_mosaic.version = 11 : i64} {
  func.func @_sae_kernel(%arg0: i32, %arg1: i32, %arg2: memref<8x128xf32, #tpu.memory_space<vmem>>, %arg3: memref<128x256xf32, #tpu.memory_space<vmem>>, %arg4: memref<1x256xf32, #tpu.memory_space<vmem>>, %arg5: memref<256x128xf32, #tpu.memory_space<vmem>>, %arg6: memref<1x128xf32, #tpu.memory_space<vmem>>, %arg7: memref<8x128xf32, #tpu.memory_space<vmem>>, %arg8: memref<8x1xf32, #tpu.memory_space<vmem>>, %arg9: memref<8x1xf32, #tpu.memory_space<vmem>>, %arg10: memref<8x1xf32, #tpu.memory_space<vmem>>, %arg11: memref<8x128xf32, #tpu.memory_space<vmem>>, %arg12: memref<8x1xf32, #tpu.memory_space<vmem>>, %arg13: memref<8x1xf32, #tpu.memory_space<vmem>>) attributes {dimension_semantics = [#tpu.dimension_semantics<parallel>, #tpu.dimension_semantics<arbitrary>], iteration_bounds = array<i64: 1, 1>, scalar_prefetch = 0 : i64, scratch_operands = 3 : i64, tpu.core_type = #tpu.core_type<tc>, window_params = [{transform_indices = @transform_0, window_bounds = array<i64: 8, 128>}, {transform_indices = @transform_1, window_bounds = array<i64: 128, 256>}, {transform_indices = @transform_2, window_bounds = array<i64: 1, 256>}, {transform_indices = @transform_3, window_bounds = array<i64: 256, 128>}, {pipeline_mode = #tpu.pipeline_mode<synchronous>, transform_indices = @transform_4, window_bounds = array<i64: 1, 128>}, {transform_indices = @transform_5, window_bounds = array<i64: 8, 128>}, {transform_indices = @transform_6, window_bounds = array<i64: 8, 1>}, {transform_indices = @transform_7, window_bounds = array<i64: 8, 1>}, {transform_indices = @transform_8, window_bounds = array<i64: 8, 1>}]} {
    %c0_i32 = arith.constant 0 : i32
    %0 = arith.cmpi eq, %arg1, %c0_i32 : i32
    %1 = arith.extui %0 : i1 to i32
    %c0_i32_0 = arith.constant 0 : i32
    %2 = arith.cmpi ne, %1, %c0_i32_0 : i32
    scf.if %2 {
      %cst_27 = arith.constant 0.000000e+00 : f32
      %33 = vector.broadcast %cst_27 : f32 to vector<8x128xf32>
      %c0_28 = arith.constant 0 : index
      %c0_29 = arith.constant 0 : index
      %34 = vector.load %arg11[%c0_28, %c0_29] : memref<8x128xf32, #tpu.memory_space<vmem>>, vector<8x128xf32>
      tpu.vector_store %arg11[%c0_28, %c0_29], %33 {strides = array<i32>} : memref<8x128xf32, #tpu.memory_space<vmem>>, vector<8x128xf32>,
      %cst_30 = arith.constant 0.000000e+00 : f32
      %35 = vector.broadcast %cst_30 : f32 to vector<8x1xf32>
      %c0_31 = arith.constant 0 : index
      %c0_32 = arith.constant 0 : index
      %36 = vector.load %arg12[%c0_31, %c0_32] : memref<8x1xf32, #tpu.memory_space<vmem>>, vector<8x1xf32>
      tpu.vector_store %arg12[%c0_31, %c0_32], %35 {strides = array<i32>} : memref<8x1xf32, #tpu.memory_space<vmem>>, vector<8x1xf32>,
      %cst_33 = arith.constant 0.000000e+00 : f32
      %37 = vector.broadcast %cst_33 : f32 to vector<8x1xf32>
      %c0_34 = arith.constant 0 : index
      %c0_35 = arith.constant 0 : index
      %38 = vector.load %arg13[%c0_34, %c0_35] : memref<8x1xf32, #tpu.memory_space<vmem>>, vector<8x1xf32>
      tpu.vector_store %arg13[%c0_34, %c0_35], %37 {strides = array<i32>} : memref<8x1xf32, #tpu.memory_space<vmem>>, vector<8x1xf32>,
    } else {
    }
    %c0 = arith.constant 0 : index
    %c0_1 = arith.constant 0 : index
    %3 = vector.load %arg2[%c0, %c0_1] : memref<8x128xf32, #tpu.memory_space<vmem>>, vector<8x128xf32>
    %c0_2 = arith.constant 0 : index
    %c0_3 = arith.constant 0 : index
    %4 = vector.load %arg3[%c0_2, %c0_3] : memref<128x256xf32, #tpu.memory_space<vmem>>, vector<128x256xf32>
    %cst = arith.constant dense<0.000000e+00> : vector<8x256xf32>
    %5 = tpu.matmul %3, %4, %cst {dimension_numbers = #tpu.dot_dimension_numbers<[1], [0], [0], [1], [0, 0, 1, 1], [], []>} : vector<8x128xf32>, vector<128x256xf32>, vector<8x256xf32> -> vector<8x256xf32>
    %c0_4 = arith.constant 0 : index
    %c0_5 = arith.constant 0 : index
    %6 = vector.load %arg4[%c0_4, %c0_5] : memref<1x256xf32, #tpu.memory_space<vmem>>, vector<1x256xf32>
    %7 = vector.broadcast %6 : vector<1x256xf32> to vector<8x256xf32>
    %8 = arith.addf %5, %7 : vector<8x256xf32>
    %cst_6 = arith.constant 0.000000e+00 : f32
    %9 = vector.broadcast %cst_6 : f32 to vector<8x256xf32>
    %10 = arith.maximumf %8, %9 : vector<8x256xf32>
    %c0_7 = arith.constant 0 : index
    %c0_8 = arith.constant 0 : index
    %11 = vector.load %arg11[%c0_7, %c0_8] : memref<8x128xf32, #tpu.memory_space<vmem>>, vector<8x128xf32>
    %c0_9 = arith.constant 0 : index
    %c0_10 = arith.constant 0 : index
    %12 = vector.load %arg5[%c0_9, %c0_10] : memref<256x128xf32, #tpu.memory_space<vmem>>, vector<256x128xf32>
    %cst_11 = arith.constant dense<0.000000e+00> : vector<8x128xf32>
    %13 = tpu.matmul %10, %12, %cst_11 {dimension_numbers = #tpu.dot_dimension_numbers<[1], [0], [0], [1], [0, 0, 1, 1], [], []>} : vector<8x256xf32>, vector<256x128xf32>, vector<8x128xf32> -> vector<8x128xf32>
    %14 = arith.addf %11, %13 : vector<8x128xf32>
    %c0_12 = arith.constant 0 : index
    %c0_13 = arith.constant 0 : index
    %15 = vector.load %arg11[%c0_12, %c0_13] : memref<8x128xf32, #tpu.memory_space<vmem>>, vector<8x128xf32>
    tpu.vector_store %arg11[%c0_12, %c0_13], %14 {strides = array<i32>} : memref<8x128xf32, #tpu.memory_space<vmem>>, vector<8x128xf32>,
    %c0_14 = arith.constant 0 : index
    %c0_15 = arith.constant 0 : index
    %16 = vector.load %arg12[%c0_14, %c0_15] : memref<8x1xf32, #tpu.memory_space<vmem>>, vector<8x1xf32>
    %cst_16 = arith.constant dense<0.000000e+00> : vector<8xf32>
    %17 = vector.multi_reduction <add>, %10, %cst_16 [1] : vector<8x256xf32> to vector<8xf32>
    %18 = vector.shape_cast %17 : vector<8xf32> to vector<8x1xf32>
    %19 = arith.addf %16, %18 : vector<8x1xf32>
    %c0_17 = arith.constant 0 : index
    %c0_18 = arith.constant 0 : index
    %20 = vector.load %arg12[%c0_17, %c0_18] : memref<8x1xf32, #tpu.memory_space<vmem>>, vector<8x1xf32>
    tpu.vector_store %arg12[%c0_17, %c0_18], %19 {strides = array<i32>} : memref<8x1xf32, #tpu.memory_space<vmem>>, vector<8x1xf32>,
    %c0_19 = arith.constant 0 : index
    %c0_20 = arith.constant 0 : index
    %21 = vector.load %arg13[%c0_19, %c0_20] : memref<8x1xf32, #tpu.memory_space<vmem>>, vector<8x1xf32>
    %cst_21 = arith.constant 0.000000e+00 : f32
    %22 = vector.broadcast %cst_21 : f32 to vector<8x256xf32>
    %23 = arith.cmpf ogt, %10, %22 : vector<8x256xf32>
    %24 = arith.extui %23 : vector<8x256xi1> to vector<8x256xi32>
    %25 = arith.sitofp %24 : vector<8x256xi32> to vector<8x256xf32>
    %cst_22 = arith.constant dense<0.000000e+00> : vector<8xf32>
    %26 = vector.multi_reduction <add>, %25, %cst_22 [1] : vector<8x256xf32> to vector<8xf32>
    %27 = vector.shape_cast %26 : vector<8xf32> to vector<8x1xf32>
    %28 = arith.addf %21, %27 : vector<8x1xf32>
    %c0_23 = arith.constant 0 : index
    %c0_24 = arith.constant 0 : index
    %29 = vector.load %arg13[%c0_23, %c0_24] : memref<8x1xf32, #tpu.memory_space<vmem>>, vector<8x1xf32>
    tpu.vector_store %arg13[%c0_23, %c0_24], %28 {strides = array<i32>} : memref<8x1xf32, #tpu.memory_space<vmem>>, vector<8x1xf32>,
    %c0_i32_25 = arith.constant 0 : i32
    %30 = arith.cmpi eq, %arg1, %c0_i32_25 : i32
    %31 = arith.extui %30 : i1 to i32
    %c0_i32_26 = arith.constant 0 : i32
    %32 = arith.cmpi ne, %31, %c0_i32_26 : i32
    scf.if %32 {
      %c0_27 = arith.constant 0 : index
      %c0_28 = arith.constant 0 : index
      %33 = vector.load %arg11[%c0_27, %c0_28] : memref<8x128xf32, #tpu.memory_space<vmem>>, vector<8x128xf32>
      %c0_29 = arith.constant 0 : index
      %c0_30 = arith.constant 0 : index
      %34 = vector.load %arg6[%c0_29, %c0_30] : memref<1x128xf32, #tpu.memory_space<vmem>>, vector<1x128xf32>
      %35 = vector.broadcast %34 : vector<1x128xf32> to vector<8x128xf32>
      %36 = arith.addf %33, %35 : vector<8x128xf32>
      %c0_31 = arith.constant 0 : index
      %c0_32 = arith.constant 0 : index
      %37 = vector.load %arg7[%c0_31, %c0_32] : memref<8x128xf32, #tpu.memory_space<vmem>>, vector<8x128xf32>
      tpu.vector_store %arg7[%c0_31, %c0_32], %36 {strides = array<i32>} : memref<8x128xf32, #tpu.memory_space<vmem>>, vector<8x128xf32>,
      %c0_33 = arith.constant 0 : index
      %c0_34 = arith.constant 0 : index
      %38 = vector.load %arg12[%c0_33, %c0_34] : memref<8x1xf32, #tpu.memory_space<vmem>>, vector<8x1xf32>
      %c0_35 = arith.constant 0 : index
      %c0_36 = arith.constant 0 : index
      %39 = vector.load %arg8[%c0_35, %c0_36] : memref<8x1xf32, #tpu.memory_space<vmem>>, vector<8x1xf32>
      tpu.vector_store %arg8[%c0_35, %c0_36], %38 {strides = array<i32>} : memref<8x1xf32, #tpu.memory_space<vmem>>, vector<8x1xf32>,
      %c0_37 = arith.constant 0 : index
      %c0_38 = arith.constant 0 : index
      %40 = vector.load %arg13[%c0_37, %c0_38] : memref<8x1xf32, #tpu.memory_space<vmem>>, vector<8x1xf32>
      %c0_39 = arith.constant 0 : index
      %c0_40 = arith.constant 0 : index
      %41 = vector.load %arg9[%c0_39, %c0_40] : memref<8x1xf32, #tpu.memory_space<vmem>>, vector<8x1xf32>
      tpu.vector_store %arg9[%c0_39, %c0_40], %40 {strides = array<i32>} : memref<8x1xf32, #tpu.memory_space<vmem>>, vector<8x1xf32>,
      %c0_41 = arith.constant 0 : index
      %c0_42 = arith.constant 0 : index
      %42 = vector.load %arg2[%c0_41, %c0_42] : memref<8x128xf32, #tpu.memory_space<vmem>>, vector<8x128xf32>
      %43 = arith.subf %36, %42 : vector<8x128xf32>
      %44 = arith.mulf %43, %43 : vector<8x128xf32>
      %cst_43 = arith.constant dense<0.000000e+00> : vector<8xf32>
      %45 = vector.multi_reduction <add>, %44, %cst_43 [1] : vector<8x128xf32> to vector<8xf32>
      %46 = vector.shape_cast %45 : vector<8xf32> to vector<8x1xf32>
      %c0_44 = arith.constant 0 : index
      %c0_45 = arith.constant 0 : index
      %47 = vector.load %arg10[%c0_44, %c0_45] : memref<8x1xf32, #tpu.memory_space<vmem>>, vector<8x1xf32>
      tpu.vector_store %arg10[%c0_44, %c0_45], %46 {strides = array<i32>} : memref<8x1xf32, #tpu.memory_space<vmem>>, vector<8x1xf32>,
    } else {
    }
    return
  }
  func.func @transform_0(%arg0: i32, %arg1: i32) -> (i32, i32) {
    %c0_i32 = arith.constant 0 : i32
    %c0_i32_0 = arith.constant 0 : i32
    return %arg0, %c0_i32 : i32, i32
  }
  func.func @transform_1(%arg0: i32, %arg1: i32) -> (i32, i32) {
    %c0_i32 = arith.constant 0 : i32
    %c0_i32_0 = arith.constant 0 : i32
    return %c0_i32, %arg1 : i32, i32
  }
  func.func @transform_2(%arg0: i32, %arg1: i32) -> (i32, i32) {
    %c0_i32 = arith.constant 0 : i32
    %c0_i32_0 = arith.constant 0 : i32
    return %c0_i32, %arg1 : i32, i32
  }
  func.func @transform_3(%arg0: i32, %arg1: i32) -> (i32, i32) {
    %c0_i32 = arith.constant 0 : i32
    %c0_i32_0 = arith.constant 0 : i32
    return %arg1, %c0_i32 : i32, i32
  }
  func.func @transform_4(%arg0: i32, %arg1: i32) -> (i32, i32) {
    %c0_i32 = arith.constant 0 : i32
    %c0_i32_0 = arith.constant 0 : i32
    %c0_i32_1 = arith.constant 0 : i32
    return %c0_i32, %c0_i32_0 : i32, i32
  }
  func.func @transform_5(%arg0: i32, %arg1: i32) -> (i32, i32) {
    %c0_i32 = arith.constant 0 : i32
    %c0_i32_0 = arith.constant 0 : i32
    return %arg0, %c0_i32 : i32, i32
  }
  func.func @transform_6(%arg0: i32, %arg1: i32) -> (i32, i32) {
    %c0_i32 = arith.constant 0 : i32
    %c0_i32_0 = arith.constant 0 : i32
    return %arg0, %c0_i32 : i32, i32
  }
  func.func @transform_7(%arg0: i32, %arg1: i32) -> (i32, i32) {
    %c0_i32 = arith.constant 0 : i32
    %c0_i32_0 = arith.constant 0 : i32
    return %arg0, %c0_i32 : i32, i32
  }
  func.func @transform_8(%arg0: i32, %arg1: i32) -> (i32, i32) {
    %c0_i32 = arith.constant 0 : i32
    %c0_i32_0 = arith.constant 0 : i32
    return %arg0, %c0_i32 : i32, i32
  }
}

</mosaic_0001>

<bundles_post_ra>
// kernel: sae_forward_pallas.1
= control target key start
LH: loop header
LB: loop body
LE: loop exit
PB: predicated region body
PF: predicated region fallthrough
CT: control target
= control target key end

     0   :  { %14 = vsyncpa [#allocation6], 0  ;;  %s595_s0 = inlined_call_operand.hbm [shape: f32[8,128], index: 0, kind: input, shape index: {}]   ;;  %s596_s1 = inlined_call_operand.hbm [shape: f32[128,256], index: 1, kind: input, shape index: {}]   ;;  %s597_s2 = inlined_call_operand.vmem [shape: f32[1,256], index: 2, kind: input, shape index: {}]   ;;  %s598_s3 = inlined_call_operand.hbm [shape: f32[256,128], index: 3, kind: input, shape index: {}]   ;;  %s599_s4 = inlined_call_operand.vmem [shape: f32[1,128], index: 4, kind: input, shape index: {}]   ;;  %s600_s5 = inlined_call_operand.hbm [shape: f32[8,128], index: 5, kind: output, shape index: {0}]   ;;  %s601_s6 = inlined_call_operand.vmem [shape: f32[8,1], index: 6, kind: output, shape index: {1}]   ;;  %s602_s7 = inlined_call_operand.vmem [shape: f32[8,1], index: 7, kind: output, shape index: {2}]   ;;  %s603_s8 = inlined_call_operand.vmem [shape: f32[8,1], index: 8, kind: output, shape index: {3}]  }
   0x1   :  { %15 = vsyncpa [#allocation9], 0 }
   0x2   :  { %16 = vsyncpa [#allocation7], 0  ;;  %s498_s27 = smov [#allocation8]  }
   0x3   :  { %s32_s28 = sshll.u32 %s498_s27, 4  ;;  %s33_s28 = int_to_ptr.vmem [resolvable:$true] %s32_s28 }
   0x4   :  { %s420_s29 = scalar_lea.vmem %s33_s28, 4096  ;;  %p425_p1 = scmp.lt.s32.totalorder %s33_s28, %s33_s28 }
   0x5   :  { %p421_p0 = scmp.ne.s32.totalorder %s33_s28, %s420_s29  ;;  %p426_p2 = scmp.lt.s32.totalorder %s420_s29, %s420_s29 }
   0x7   :  { %p427_p3 = por %p426_p2, %p425_p1 }
   0x9   :  { %p428_p4 = pnand %p427_p3, %p421_p0 }
   0xb   :  { %431 = shalt.err (!%p428_p4)
}
   0xc   :  { %s499_s30 = smov 256   ;;  %s500_s9 = smov 16  }
   0xd   :  { %38 = dma.hbm_to_vmem [thread:$0]  %s596_s1, 4096, %s33_s28, [#allocation9], %s499_s30, %s499_s30, %s500_s9  }
   0xe   :  { %s501_s12 = smov [#allocation5]   ;;  %s502_s14 = smov [#allocation10]  }
   0xf   :  { %s23_s13 = sshll.u32 %s501_s12, 4  ;;  %s46_s15 = sshll.u32 %s502_s14, 4  ;;  %s24_s13 = int_to_ptr.vmem [resolvable:$true] %s23_s13  ;;  %s47_s15 = int_to_ptr.vmem [resolvable:$true] %s46_s15 }
  0x10   :  { %s440_s16 = scalar_lea.vmem %s24_s13, 128  ;;  %p445_p6 = scmp.lt.s32.totalorder %s24_s13, %s24_s13 }
  0x11   :  { %p441_p5 = scmp.ne.s32.totalorder %s24_s13, %s440_s16  ;;  %p446_p7 = scmp.lt.s32.totalorder %s440_s16, %s440_s16 }
  0x13   :  { %p447_p8 = por %p446_p7, %p445_p6 }
  0x15   :  { %p448_p9 = pnand %p447_p8, %p441_p5 }
  0x17   :  { %451 = shalt.err (!%p448_p9)
}
  0x18   :  { %26 = dma.hbm_to_vmem [thread:$0]  %s595_s0, 128, %s24_s13, [#allocation6]  }
  0x19   :  { %s460_s19 = scalar_lea.vmem %s47_s15, 4096  ;;  %p465_p11 = scmp.lt.s32.totalorder %s47_s15, %s47_s15 }
  0x1a   :  { %p461_p10 = scmp.ne.s32.totalorder %s47_s15, %s460_s19  ;;  %p466_p12 = scmp.lt.s32.totalorder %s460_s19, %s460_s19 }
  0x1c   :  { %p467_p13 = por %p466_p12, %p465_p11 }
  0x1e   :  { %p468_p0 = pnand %p467_p13, %p461_p10 }
  0x20   :  { %471 = shalt.err (!%p468_p0)
}
  0x21   :  { %s503_s1 = smov 128   ;;  %s504_s20 = smov 8  }
  0x22   :  { %52 = dma.hbm_to_vmem [thread:$0]  %s598_s3, 4096, %s47_s15, [#allocation9], %s503_s1, %s503_s1, %s504_s20  }
  0x23   :  { %492 = dma.done.wait [#allocation6], 128  }
  0x24   :  { %493 = vsyncadd [#allocation6], 4294967168 }
  0x25   :  { %494 = dma.done.wait [#allocation9], 8192  }
  0x26   :  { %495 = vsyncadd [#allocation9], 4294959104  ;;  %vm69_vm0 = vcmask 7168   ;;  %v505_v0 = vmov 0.0   ;;  %v104_v1 = vld [vmem:[#allocation8 + $0xf8] sm:$0xff]  ;;  %v103_v2 = vld [vmem:[#allocation8 + $0xf0] sm:$0xff] }
  0x27   :  { %70 = vst.msk [vmem:[#allocation3] sm:$0xff] %vm69_vm0, %v505_v0  ;;  %71 = vst.msk [vmem:[#allocation4] sm:$0xff] %vm69_vm0, %v505_v0  ;;  %181 = vmatprep.mubr.f32.mxu0 %v505_v0  ;;  %v102_v3 = vld [vmem:[#allocation8 + $0xe8] sm:$0xff]  ;;  %117 = vmatprep.subr.mxu0 %v104_v1  ;;  %v101_v4 = vld [vmem:[#allocation8 + $0xe0] sm:$0xff] }
  0x28   :  { %118 = vmatpush1.msra.mxu0 %v103_v2  ;;  %v100_v5 = vld [vmem:[#allocation8 + $0xd8] sm:$0xff]  ;;  %v99_v6 = vld [vmem:[#allocation8 + $0xd0] sm:$0xff]  ;;  %v98_v7 = vld [vmem:[#allocation8 + $0xc8] sm:$0xff] }
  0x29   :  { %119 = vmatprep.subr.mxu0 %v102_v3  ;;  %v97_v8 = vld [vmem:[#allocation8 + $0xc0] sm:$0xff]  ;;  %v96_v9 = vld [vmem:[#allocation8 + $0xb8] sm:$0xff]  ;;  %v95_v10 = vld [vmem:[#allocation8 + $0xb0] sm:$0xff]  ;;  %v107_v3 = vlaneseq }
  0x2a   :  { %120 = vmatpush1.msra.mxu0 %v101_v4  ;;  %v94_v11 = vld [vmem:[#allocation8 + $0xa8] sm:$0xff]  ;;  %v93_v12 = vld [vmem:[#allocation8 + $0xa0] sm:$0xff]  ;;  %v92_v13 = vld [vmem:[#allocation8 + $0x98] sm:$0xff] }
  0x2b   :  { %121 = vmatprep.subr.mxu0 %v100_v5  ;;  %v91_v14 = vld [vmem:[#allocation8 + $0x90] sm:$0xff]  ;;  %v222_v15 = vld [vmem:[#allocation10 + $0xf8] sm:$0xff]  ;;  %v90_v18 = vld [vmem:[#allocation8 + $0x88] sm:$0xff]  ;;  %v108_v4 = vshrl.u32 %v107_v3, 7 }
  0x2c   :  { %122 = vmatpush1.msra.mxu0 %v99_v6  ;;  %v206_v16 = vld [vmem:[#allocation10 + $0x78] sm:$0xff]  ;;  %v221_v17 = vld [vmem:[#allocation10 + $0xf0] sm:$0xff]  ;;  %368 = vmatprep.subr.mxu1 %v222_v15  ;;  %v89_v20 = vld [vmem:[#allocation8 + $0x80] sm:$0xff] }
  0x2d   :  { %123 = vmatprep.subr.mxu0 %v98_v7  ;;  %v205_v19 = vld [vmem:[#allocation10 + $0x70] sm:$0xff]  ;;  %369 = vmatpush3.msra.mxu1 %v206_v16  ;;  %v220_v21 = vld [vmem:[#allocation10 + $0xe8] sm:$0xff]  ;;  %v88_v22 = vld [vmem:[#allocation8 + $0x78] sm:$0xff]  ;;  %v109_v5 = vsub.s32 0, %v108_v4  ;;  %v113_v7 = vsub.s32 1, %v108_v4 }
  0x2e   :  { %124 = vmatpush1.msra.mxu0 %v97_v8  ;;  %370 = vmatprep.subr.mxu1 %v221_v17  ;;  %v204_v23 = vld [vmem:[#allocation10 + $0x68] sm:$0xff]  ;;  %v87_v24 = vld [vmem:[#allocation8 + $0x70] sm:$0xff]  ;;  %v219_v25 = vld [vmem:[#allocation10 + $0xe0] sm:$0xff] }
  0x2f   :  { %125 = vmatprep.subr.mxu0 %v96_v9  ;;  %371 = vmatpush3.msra.mxu1 %v205_v19  ;;  %v86_v26 = vld [vmem:[#allocation8 + $0x68] sm:$0xff]  ;;  %v203_v27 = vld [vmem:[#allocation10 + $0x60] sm:$0xff]  ;;  %v218_v29 = vld [vmem:[#allocation10 + $0xd8] sm:$0xff] }
  0x30   :  { %126 = vmatpush1.msra.mxu0 %v95_v10  ;;  %372 = vmatprep.subr.mxu1 %v220_v21  ;;  %v85_v28 = vld [vmem:[#allocation8 + $0x60] sm:$0xff]  ;;  %v84_v30 = vld [vmem:[#allocation8 + $0x58] sm:$0xff]  ;;  %v83_v32 = vld [vmem:[#allocation8 + $0x50] sm:$0xff] }
  0x31   :  { %127 = vmatprep.subr.mxu0 %v94_v11  ;;  %373 = vmatpush3.msra.mxu1 %v204_v23  ;;  %v202_v31 = vld [vmem:[#allocation10 + $0x58] sm:$0xff]  ;;  %v217_v33 = vld [vmem:[#allocation10 + $0xd0] sm:$0xff]  ;;  %v82_v34 = vld [vmem:[#allocation8 + $0x48] sm:$0xff] }
  0x32   :  { %128 = vmatpush1.msra.mxu0 %v93_v12  ;;  %374 = vmatprep.subr.mxu1 %v219_v25  ;;  %v201_v35 = vld [vmem:[#allocation10 + $0x50] sm:$0xff]  ;;  %v81_v36 = vld [vmem:[#allocation8 + $0x40] sm:$0xff]  ;;  %v216_v37 = vld [vmem:[#allocation10 + $0xc8] sm:$0xff] }
  0x33   :  { %129 = vmatprep.subr.mxu0 %v92_v13  ;;  %375 = vmatpush3.msra.mxu1 %v203_v27  ;;  %v80_v38 = vld [vmem:[#allocation8 + $0x38] sm:$0xff]  ;;  %v200_v39 = vld [vmem:[#allocation10 + $0x48] sm:$0xff]  ;;  %v79_v40 = vld [vmem:[#allocation8 + $0x30] sm:$0xff] }
  0x34   :  { %130 = vmatpush1.msra.mxu0 %v91_v14  ;;  %376 = vmatprep.subr.mxu1 %v218_v29  ;;  %v215_v41 = vld [vmem:[#allocation10 + $0xc0] sm:$0xff]  ;;  %v78_v42 = vld [vmem:[#allocation8 + $0x28] sm:$0xff]  ;;  %v214_v45 = vld [vmem:[#allocation10 + $0xb8] sm:$0xff] }
  0x35   :  { %131 = vmatprep.subr.mxu0 %v90_v18  ;;  %377 = vmatpush3.msra.mxu1 %v202_v31  ;;  %v199_v43 = vld [vmem:[#allocation10 + $0x40] sm:$0xff]  ;;  %v76_v46 = vld [vmem:[#allocation8 + $0x18] sm:$0xff]  ;;  %v75_v48 = vld [vmem:[#allocation8 + $0x10] sm:$0xff] }
  0x36   :  { %132 = vmatpush1.msra.mxu0 %v89_v20  ;;  %378 = vmatprep.subr.mxu1 %v217_v33  ;;  %v77_v44 = vld [vmem:[#allocation8 + $0x20] sm:$0xff]  ;;  %v198_v47 = vld [vmem:[#allocation10 + $0x38] sm:$0xff]  ;;  %v213_v49 = vld [vmem:[#allocation10 + $0xb0] sm:$0xff] }
  0x37   :  { %133 = vmatprep.subr.mxu0 %v88_v22  ;;  %379 = vmatpush3.msra.mxu1 %v201_v35  ;;  %v74_v50 = vld [vmem:[#allocation8 + $0x8] sm:$0xff]  ;;  %v197_v51 = vld [vmem:[#allocation10 + $0x30] sm:$0xff]  ;;  %v73_v52 = vld [vmem:[#allocation8] sm:$0xff] }
  0x38   :  { %134 = vmatpush1.msra.mxu0 %v87_v24  ;;  %380 = vmatprep.subr.mxu1 %v216_v37  ;;  %v212_v53 = vld [vmem:[#allocation10 + $0xa8] sm:$0xff]  ;;  %v566_v54 = vld [vmem:[#allocation5] sm:$0xff]  ;;  %v211_v56 = vld [vmem:[#allocation10 + $0xa0] sm:$0xff] }
  0x39   :  { %135 = vmatprep.subr.mxu0 %v86_v26  ;;  %381 = vmatpush3.msra.mxu1 %v200_v39  ;;  %v196_v55 = vld [vmem:[#allocation10 + $0x28] sm:$0xff]  ;;  %v195_v57 = vld [vmem:[#allocation10 + $0x20] sm:$0xff]  ;;  %v210_v58 = vld [vmem:[#allocation10 + $0x98] sm:$0xff] }
  0x3a   :  { %136 = vmatpush1.msra.mxu0 %v85_v28  ;;  %382 = vmatprep.subr.mxu1 %v215_v41  ;;  %v194_v59 = vld [vmem:[#allocation10 + $0x18] sm:$0xff]  ;;  %v209_v60 = vld [vmem:[#allocation10 + $0x90] sm:$0xff]  ;;  %v208_v62 = vld [vmem:[#allocation10 + $0x88] sm:$0xff] }
  0x3b   :  { %137 = vmatprep.subr.mxu0 %v84_v30  ;;  %383 = vmatpush3.msra.mxu1 %v199_v43  ;;  %v193_v61 = vld [vmem:[#allocation10 + $0x10] sm:$0xff]  ;;  %v192_v63 = vld [vmem:[#allocation10 + $0x8] sm:$0xff]  ;;  %v207_v1 = vld [vmem:[#allocation10 + $0x80] sm:$0xff] }
  0x3c   :  { %138 = vmatpush1.msra.mxu0 %v83_v32  ;;  %384 = vmatprep.subr.mxu1 %v214_v45  ;;  %v191_v2 = vld [vmem:[#allocation10] sm:$0xff]  ;;  %v105_v6 = vld [vmem:[%s597_s2] sm:$0x3]  ;;  %v302_v23 = vld [vmem:[#allocation4] sm:$0xff] }
  0x3d   :  { %139 = vmatprep.subr.mxu0 %v82_v34  ;;  %385 = vmatpush3.msra.mxu1 %v198_v47  ;;  %v110_v8 = vrot.slane %v105_v6, %v109_v5  ;;  %v114_v9 = vrot.slane %v105_v6, %v113_v7  ;;  %v295_v20 = vld [vmem:[#allocation3] sm:$0xff] }
  0x3e   :  { %140 = vmatpush1.msra.mxu0 %v81_v36  ;;  %386 = vmatprep.subr.mxu1 %v213_v49  ;;  %v367_v29 = vld [vmem:[%s599_s4] ss:$0 sm:$0xff] }
  0x3f   :  { %141 = vmatprep.subr.mxu0 %v80_v38  ;;  %387 = vmatpush3.msra.mxu1 %v197_v51 }
  0x40   :  { %142 = vmatpush1.msra.mxu0 %v79_v40  ;;  %388 = vmatprep.subr.mxu1 %v212_v53 }
  0x41   :  { %143 = vmatprep.subr.mxu0 %v78_v42  ;;  %389 = vmatpush3.msra.mxu1 %v196_v55 }
  0x42   :  { %144 = vmatpush1.msra.mxu0 %v77_v44  ;;  %390 = vmatprep.subr.mxu1 %v211_v56 }
  0x43   :  { %145 = vmatprep.subr.mxu0 %v76_v46  ;;  %391 = vmatpush3.msra.mxu1 %v195_v57 }
  0x44   :  { %146 = vmatpush1.msra.mxu0 %v75_v48  ;;  %392 = vmatprep.subr.mxu1 %v210_v58 }
  0x45   :  { %147 = vmatprep.subr.mxu0 %v74_v50  ;;  %393 = vmatpush3.msra.mxu1 %v194_v59 }
  0x46   :  { %148 = vmatpush1.msra.mxu0 %v73_v52  ;;  %394 = vmatprep.subr.mxu1 %v209_v60 }
  0x47   :  { %182 = vmatmul.mubr.f32.vlgmr.msra.gmra.mxu0 %v566_v54  ;;  %395 = vmatpush3.msra.mxu1 %v193_v61 }
  0x48   :  { %396 = vmatprep.subr.mxu1 %v208_v62 }
  0x49   :  { %397 = vmatpush3.msra.mxu1 %v192_v63 }
  0x4a   :  { %398 = vmatprep.subr.mxu1 %v207_v1 }
  0x4b   :  { %399 = vmatpush3.msra.mxu1 %v191_v2 }
 0x107   :  { %v183_v10 = vpop.f32.mrf.mxu0 }
 0x108   :  { %v184_v11 = vadd.f32 %v183_v10, %v110_v8 }
 0x109   :  { %v185_v12 = vpop.f32.mrf.mxu0 }
 0x10a   :  { %v188_v13 = vmax.f32 %v184_v11, 0.0  ;;  %v186_v14 = vadd.f32 %v185_v12, %v114_v9 }
 0x10c   :  { %v189_v15 = vmax.f32 %v186_v14, 0.0  ;;  %vm303_vm1 = vcmp.gt.f32.partialorder %v188_v13, 0.0 }
 0x10d   :  { %v365_v18 = vsel %vm303_vm1, 1.0, %v505_v0 }
 0x10e   :  { %287 = vmatprep.mubr.f32.mxu1 %v189_v15  ;;  %v296_v16 = vadd.f32 %v189_v15, %v188_v13  ;;  %vm304_vm2 = vcmp.gt.f32.partialorder %v189_v15, 0.0 }
 0x10f   :  { %288 = vmatmul.mubr.f32.vlgmr.msra.gmra.mxu1 %v188_v13  ;;  %v366_v17 = vsel %vm304_vm2, 1.0, %v505_v0 }
 0x110   :  { %297 = vadd.xlane.f32.xlu0 %v296_v16  ;;  %v309_v19 = vadd.f32 %v366_v17, %v365_v18 }
 0x114   :  { %310 = vadd.xlane.f32.xlu0 %v309_v19 }
 0x199   :  { %v298_v21 = vpop.xlane.xlu0 %297 }
 0x19a   :  { %v299_v22 = vadd.f32 %v298_v21, %v295_v20 }
 0x19c   :  { %301 = vst.msk [vmem:[#allocation3] sm:$0xff] %vm69_vm0, %v299_v22 }
 0x19d   :  { %v311_v24 = vpop.xlane.xlu0 %310 }
 0x19e   :  { %v312_v25 = vadd.f32 %v311_v24, %v302_v23 }
 0x1a0   :  { %313 = vst.msk [vmem:[#allocation4] sm:$0xff] %vm69_vm0, %v312_v25 }
 0x1a3   :  { %v327_v26 = vld [vmem:[#allocation3] sm:$0xff] }
 0x1a4   :  { %328 = vst.msk [vmem:[%s601_s6] sm:$0xff] %vm69_vm0, %v327_v26  ;;  %s506_s6 = smov [#allocation11]  }
 0x1a5   :  { %s343_s28 = sshll.u32 %s506_s6, 4  ;;  %s344_s28 = int_to_ptr.vmem [resolvable:$true] %s343_s28 }
 0x1a6   :  { %s472_s29 = scalar_lea.vmem %s344_s28, 128  ;;  %p477_p2 = scmp.lt.s32.totalorder %s344_s28, %s344_s28 }
 0x1a7   :  { %v329_v27 = vld [vmem:[#allocation4] sm:$0xff]  ;;  %p473_p1 = scmp.ne.s32.totalorder %s344_s28, %s472_s29  ;;  %p478_p3 = scmp.lt.s32.totalorder %s472_s29, %s472_s29 }
 0x1a8   :  { %330 = vst.msk [vmem:[%s602_s7] sm:$0xff] %vm69_vm0, %v329_v27 }
 0x1a9   :  { %p479_p4 = por %p478_p3, %p477_p2 }
 0x1ab   :  { %p480_p5 = pnand %p479_p4, %p473_p1 }
 0x1cf   :  { %v400_v0 = vpop.f32.mrf.mxu1 }
 0x1d1   :  { %v401_v28 = vpop.f32.mrf.mxu1 }
 0x1d2   :  { %v402_v30 = vadd.f32 %v401_v28, %v400_v0 }
 0x1d4   :  { %v325_v31 = vadd.f32 %v402_v30, %v367_v29 }
 0x1d6   :  { %v332_v32 = vsub.f32 %v325_v31, %v566_v54  ;;  %326 = vst [vmem:[#allocation11] sm:$0xff] %v325_v31 }
 0x1d8   :  { %v333_v33 = vmul.f32 %v332_v32, %v332_v32 }
 0x1da   :  { %334 = vadd.xlane.f32.xlu1 %v333_v33 }
 0x1db   :  { %483 = shalt.err (!%p480_p5)
}
 0x1dc   :  { %346 = dma.vmem_to_hbm [thread:$0]  %s344_s28, 128, %s600_s5, [#allocation7]  }
 0x263   :  { %v335_v34 = vpop.xlane.xlu1 %334 }
 0x264   :  { %336 = vst.msk [vmem:[%s603_s8] sm:$0xff] %vm69_vm0, %v335_v34 }
 0x265   :  { %496 = dma.done.wait [#allocation7], 128  }
 0x266   :  { %497 = vsyncadd [#allocation7], 4294967168 }
 0x267   :  { %362 = vsyncpa [#allocation6], 1 }
 0x268   :  { %363 = vsyncpa [#allocation9], 1 }
 0x269   :  { %364 = vsyncpa [#allocation7], 1 }

</bundles_post_ra>
